<compile_context>
chip_gen: v7x
topology: tpu7x:2x2x1
jax: 0.10.0
libtpu: 0.0.40
codegen_flags: <defaults>
</compile_context>

<pallas_src>
import numpy as np
import jax
import jax.numpy as jnp
from jax.experimental import pallas as pl
from jax.experimental.pallas import tpu as pltpu


# ---------------------------------------------------------------------------
# Host-side construction of the linear pooling / upsampling operators.
# ---------------------------------------------------------------------------
def adaptive_pool_matrix(out_size: int, in_size: int) -> np.ndarray:
    """A[i, h] such that pooled[i] = sum_h A[i, h] * x[h]  (torch AdaptiveAvgPool)."""
    A = np.zeros((out_size, in_size), np.float32)
    for i in range(out_size):
        start = (i * in_size) // out_size
        end = -(-((i + 1) * in_size) // out_size)  # ceil
        A[i, start:end] = 1.0 / float(end - start)
    return A


def upsample_matrix(out_size: int, in_size: int) -> np.ndarray:
    """U[h, i] for 1-D bilinear interpolation with align_corners=True."""
    U = np.zeros((out_size, in_size), np.float32)
    for h in range(out_size):
        if in_size == 1 or out_size == 1:
            src = 0.0
        else:
            src = h * (in_size - 1) / (out_size - 1)
        i0 = min(int(np.floor(src)), in_size - 1)
        i1 = min(i0 + 1, in_size - 1)
        frac = src - i0
        U[h, i0] += 1.0 - frac
        U[h, i1] += frac
    return U


# ---------------------------------------------------------------------------
# Pallas kernel: grid = (batch, channel-tile).  All branches fused.
# ---------------------------------------------------------------------------
def _make_ppm_kernel(C: int, Ct: int, KC: int, RT: int):
    """Build the kernel with the static tiling parameters closed over."""

    def kernel(x_ref, m_ref, w_ref, bm_ref, u_ref, o_ref, acc_ref):
        # x_ref:   (1, Ct, HW)   channel tile of the current batch element
        # m_ref:   (HW, BPT)     fused adaptive-avg-pool operator (bf16)
        # w_ref:   (RT, Ct)      fused 1x1 conv weights (BN scale folded, bf16)
        # bm_ref:  (RT, BPT)     bias inside own branch columns, -1e30 elsewhere
        # u_ref:   (BPT, HW)     fused bilinear upsample operator (bf16)
        # o_ref:   (1, C+RT, HW) concatenated output block (resident over k)
        # acc_ref: (RT, BPT)     f32 conv accumulator (scratch)
        k = pl.program_id(1)

        x = x_ref[0]                                   # (Ct, HW), input dtype

        # --- concat pass-through: write this channel tile of x straight into
        #     the output (bit-exact, no extra HBM concatenate pass).
        if KC == 1:
            o_ref[0, 0:Ct, :] = x.astype(o_ref.dtype)
        else:
            off = pl.multiple_of(k * Ct, Ct)
            o_ref[0, pl.ds(off, Ct), :] = x.astype(o_ref.dtype)

        # --- adaptive average pooling for all bins at once (bf16 MXU, f32 acc)
        pooled = jnp.dot(x.astype(jnp.bfloat16), m_ref[...],
                         preferred_element_type=jnp.float32)      # (Ct, BPT)

        # --- fused 1x1 conv (BN scale already folded into w), accumulated
        #     across channel tiles.
        partial = jnp.dot(w_ref[...], pooled.astype(jnp.bfloat16),
                          preferred_element_type=jnp.float32)     # (RT, BPT)

        @pl.when(k == 0)
        def _init():
            acc_ref[...] = jnp.zeros_like(acc_ref)

        acc_ref[...] += partial

        @pl.when(k == KC - 1)
        def _finalize():
            # bias + ReLU; bm holds the BN bias inside each row's own branch
            # columns and -1e30 elsewhere, so ReLU zeroes cross-branch and
            # padded columns before the fused upsample (no branch mixing).
            z = jnp.maximum(acc_ref[...] + bm_ref[...], 0.0)      # (RT, BPT) f32
            up = jnp.dot(z.astype(jnp.bfloat16), u_ref[...],
                         preferred_element_type=jnp.float32)      # (RT, HW)
            o_ref[0, C:C + RT, :] = up.astype(o_ref.dtype)

    return kernel


# ---------------------------------------------------------------------------
# Wrapper
# ---------------------------------------------------------------------------
def ppm_pallas(x, conv_w, bn_scale, bn_bias, bins, *, c_tile=512):
    # Public layout is NCHW (matching PyTorch).  Inside the kernel each batch
    # element is a (C, H*W) slab: pooling, 1x1 conv and bilinear upsample are
    # plain 2-D matmuls with the lane-dense H*W axis last.
    N, C, H, W = x.shape
    nb, R, _ = conv_w.shape
    RT = nb * R
    HW = H * W
    Ctot = C + RT

    # Channel tiling (reduction axis of the 1x1 conv).  Full-C tile when small.
    if C <= c_tile:
        Ct, KC = C, 1
    else:
        Ct = c_tile
        while Ct >= 8 and C % Ct != 0:
            Ct -= 8
        if Ct < 8:
            Ct = C
        KC = C // Ct

    # ---- fused operators (all branches stacked on the pooled-pixel axis) ----
    sizes = [b * b for b in bins]
    total = sum(sizes)
    BPT = max(64, -(-total // 64) * 64)          # pad to a multiple of 64

    M_np = np.zeros((HW, BPT), np.float32)       # pooling operator
    U_np = np.zeros((BPT, HW), np.float32)       # upsample operator
    mask_np = np.zeros((RT, BPT), np.float32)    # per-row valid-column mask
    off = 0
    for bi, b in enumerate(bins):
        ah = adaptive_pool_matrix(b, H)
        aw = adaptive_pool_matrix(b, W)
        uh = upsample_matrix(H, b)
        uw = upsample_matrix(W, b)
        M_np[:, off:off + b * b] = np.kron(ah, aw).T
        U_np[off:off + b * b, :] = np.kron(uh, uw).T
        mask_np[bi * R:(bi + 1) * R, off:off + b * b] = 1.0
        off += b * b
    assert off == total <= BPT

    m_all = jnp.asarray(M_np, dtype=jnp.bfloat16)                  # (HW, BPT)
    u_all = jnp.asarray(U_np, dtype=jnp.bfloat16)                  # (BPT, HW)

    # Fold BN scale into the conv weight; stack branches on rows.
    w_all = (bn_scale[:, :, None] * conv_w).reshape(RT, C).astype(jnp.bfloat16)

    # Bias / block-mask: bias inside own branch columns, -1e30 elsewhere.
    bias_col = bn_bias.reshape(RT, 1).astype(jnp.float32)
    biasmask = jnp.where(jnp.asarray(mask_np) > 0, bias_col,
                         jnp.float32(-1e30))                       # (RT, BPT)

    x2 = x.reshape(N, C, HW)
    kernel = _make_ppm_kernel(C=C, Ct=Ct, KC=KC, RT=RT)

    out = pl.pallas_call(
        kernel,
        out_shape=jax.ShapeDtypeStruct((N, Ctot, HW), x.dtype),
        grid=(N, KC),
        in_specs=[
            pl.BlockSpec((1, Ct, HW), lambda n, k: (n, k, 0)),     # x tile
            pl.BlockSpec((HW, BPT), lambda n, k: (0, 0)),          # pool op (resident)
            pl.BlockSpec((RT, Ct), lambda n, k: (0, k)),           # conv weights
            pl.BlockSpec((RT, BPT), lambda n, k: (0, 0)),          # bias/mask (resident)
            pl.BlockSpec((BPT, HW), lambda n, k: (0, 0)),          # upsample op (resident)
        ],
        out_specs=pl.BlockSpec((1, Ctot, HW), lambda n, k: (n, 0, 0)),
        scratch_shapes=[pltpu.VMEM((RT, BPT), jnp.float32)],
        compiler_params=pltpu.CompilerParams(
            dimension_semantics=("parallel", "arbitrary"),
            vmem_limit_bytes=64 * 1024 * 1024),
    )(x2, m_all, w_all, biasmask, u_all)

    return out.reshape(N, Ctot, H, W)


# ---------------------------------------------------------------------------
# Pure-JAX reference (f32) for correctness checking
# ---------------------------------------------------------------------------
def ppm_reference(x, conv_w, bn_scale, bn_bias, bins):
    N, C, H, W = x.shape
    outs = [x]
    for bi, b in enumerate(bins):
        ah = jnp.asarray(adaptive_pool_matrix(b, H))
        aw = jnp.asarray(adaptive_pool_matrix(b, W))
        uh = jnp.asarray(upsample_matrix(H, b))
        uw = jnp.asarray(upsample_matrix(W, b))
        pooled = jnp.einsum('nchw,ih,jw->ncij', x, ah, aw)
        y = jnp.einsum('rc,ncij->nrij', conv_w[bi], pooled)
        z = jnp.maximum(
            y * bn_scale[bi][None, :, None, None]
            + bn_bias[bi][None, :, None, None], 0.0)
        up = jnp.einsum('nrij,hi,wj->nrhw', z, uh, uw)
        outs.append(up)
    return jnp.concatenate(outs, axis=1)


if __name__ == "__main__":
    key = jax.random.PRNGKey(0)
    N, C, H, W = 2, 8, 16, 16          # batch, in_dim, spatial
    R = 8                              # reduction_dim
    bins = (1, 2, 3, 6)
    nb = len(bins)

    k1, k2, k3, k4, k5, k6 = jax.random.split(key, 6)
    x = jax.random.normal(k1, (N, C, H, W), jnp.float32)

    # Deterministic synthetic parameters (eval-mode BatchNorm folding).
    conv_w = jax.random.normal(k2, (nb, R, C), jnp.float32) / jnp.sqrt(float(C))
    gamma = 1.0 + 0.1 * jax.random.normal(k3, (nb, R), jnp.float32)
    beta = 0.1 * jax.random.normal(k4, (nb, R), jnp.float32)
    running_mean = 0.1 * jax.random.normal(k5, (nb, R), jnp.float32)
    running_var = 1.0 + 0.5 * jax.random.uniform(k6, (nb, R), jnp.float32)
    eps = 1e-5
    bn_scale = gamma / jnp.sqrt(running_var + eps)
    bn_bias = beta - running_mean * bn_scale

    out = ppm_pallas(x, conv_w, bn_scale, bn_bias, bins)
    out = jax.block_until_ready(out)

    ref = ppm_reference(x, conv_w, bn_scale, bn_bias, bins)
    assert out.shape == (N, C + nb * R, H, W), out.shape
    # Pass-through channels must be bit-exact (x is never re-quantized).
    np.testing.assert_array_equal(np.asarray(out[:, :C]), np.asarray(x))
    # Branch channels: bf16 MXU operands -> loosened tolerance vs f32 reference.
    np.testing.assert_allclose(np.asarray(out), np.asarray(ref),
                               rtol=2e-2, atol=2e-2)
    print("KERNEL_OK")
</pallas_src>

<mosaic_0001>
module attributes {stable_mosaic.version = 11 : i64} {
  func.func @kernel(%arg0: i32, %arg1: i32, %arg2: memref<1x8x256xf32, #tpu.memory_space<vmem>>, %arg3: memref<256x64xbf16, #tpu.memory_space<vmem>>, %arg4: memref<32x8xbf16, #tpu.memory_space<vmem>>, %arg5: memref<32x64xf32, #tpu.memory_space<vmem>>, %arg6: memref<64x256xbf16, #tpu.memory_space<vmem>>, %arg7: memref<1x40x256xf32, #tpu.memory_space<vmem>>, %arg8: memref<32x64xf32, #tpu.memory_space<vmem>>) attributes {dimension_semantics = [#tpu.dimension_semantics<parallel>, #tpu.dimension_semantics<arbitrary>], iteration_bounds = array<i64: 2, 1>, scalar_prefetch = 0 : i64, scratch_operands = 1 : i64, tpu.core_type = #tpu.core_type<tc>, window_params = [{transform_indices = @transform_0, window_bounds = array<i64: 1, 8, 256>}, {pipeline_mode = #tpu.pipeline_mode<synchronous>, transform_indices = @transform_1, window_bounds = array<i64: 256, 64>}, {transform_indices = @transform_2, window_bounds = array<i64: 32, 8>}, {pipeline_mode = #tpu.pipeline_mode<synchronous>, transform_indices = @transform_3, window_bounds = array<i64: 32, 64>}, {pipeline_mode = #tpu.pipeline_mode<synchronous>, transform_indices = @transform_4, window_bounds = array<i64: 64, 256>}, {transform_indices = @transform_5, window_bounds = array<i64: 1, 40, 256>}]} {
    %c0 = arith.constant 0 : index
    %c0_0 = arith.constant 0 : index
    %c0_1 = arith.constant 0 : index
    %0 = vector.load %arg2[%c0, %c0_0, %c0_1] : memref<1x8x256xf32, #tpu.memory_space<vmem>>, vector<1x8x256xf32>
    %1 = vector.shape_cast %0 : vector<1x8x256xf32> to vector<8x256xf32>
    %c0_2 = arith.constant 0 : index
    %c0_3 = arith.constant 0 : index
    %c0_4 = arith.constant 0 : index
    %2 = vector.load %arg7[%c0_2, %c0_3, %c0_4] : memref<1x40x256xf32, #tpu.memory_space<vmem>>, vector<1x8x256xf32>
    %3 = vector.shape_cast %2 : vector<1x8x256xf32> to vector<8x256xf32>
    %4 = vector.shape_cast %1 : vector<8x256xf32> to vector<1x8x256xf32>
    tpu.vector_store %arg7[%c0_2, %c0_3, %c0_4], %4 {strides = array<i32>} : memref<1x40x256xf32, #tpu.memory_space<vmem>>, vector<1x8x256xf32>,
    %5 = arith.truncf %1 : vector<8x256xf32> to vector<8x256xbf16>
    %c0_5 = arith.constant 0 : index
    %c0_6 = arith.constant 0 : index
    %6 = vector.load %arg3[%c0_5, %c0_6] : memref<256x64xbf16, #tpu.memory_space<vmem>>, vector<256x64xbf16>
    %cst = arith.constant dense<0.000000e+00> : vector<8x64xf32>
    %7 = tpu.matmul %5, %6, %cst {dimension_numbers = #tpu.dot_dimension_numbers<[1], [0], [0], [1], [0, 0, 1, 1], [], []>} : vector<8x256xbf16>, vector<256x64xbf16>, vector<8x64xf32> -> vector<8x64xf32>
    %c0_7 = arith.constant 0 : index
    %c0_8 = arith.constant 0 : index
    %8 = vector.load %arg4[%c0_7, %c0_8] : memref<32x8xbf16, #tpu.memory_space<vmem>>, vector<32x8xbf16>
    %9 = arith.truncf %7 : vector<8x64xf32> to vector<8x64xbf16>
    %cst_9 = arith.constant dense<0.000000e+00> : vector<32x64xf32>
    %10 = tpu.matmul %8, %9, %cst_9 {dimension_numbers = #tpu.dot_dimension_numbers<[1], [0], [0], [1], [0, 0, 1, 1], [], []>} : vector<32x8xbf16>, vector<8x64xbf16>, vector<32x64xf32> -> vector<32x64xf32>
    %c0_i32 = arith.constant 0 : i32
    %11 = arith.cmpi eq, %arg1, %c0_i32 : i32
    %12 = arith.extui %11 : i1 to i32
    %c0_i32_10 = arith.constant 0 : i32
    %13 = arith.cmpi ne, %12, %c0_i32_10 : i32
    scf.if %13 {
      %cst_17 = arith.constant 0.000000e+00 : f32
      %20 = vector.broadcast %cst_17 : f32 to vector<32x64xf32>
      %c0_18 = arith.constant 0 : index
      %c0_19 = arith.constant 0 : index
      %21 = vector.load %arg8[%c0_18, %c0_19] : memref<32x64xf32, #tpu.memory_space<vmem>>, vector<32x64xf32>
      tpu.vector_store %arg8[%c0_18, %c0_19], %20 {strides = array<i32>} : memref<32x64xf32, #tpu.memory_space<vmem>>, vector<32x64xf32>,
    } else {
    }
    %c0_11 = arith.constant 0 : index
    %c0_12 = arith.constant 0 : index
    %14 = vector.load %arg8[%c0_11, %c0_12] : memref<32x64xf32, #tpu.memory_space<vmem>>, vector<32x64xf32>
    %15 = arith.addf %14, %10 : vector<32x64xf32>
    %c0_13 = arith.constant 0 : index
    %c0_14 = arith.constant 0 : index
    %16 = vector.load %arg8[%c0_13, %c0_14] : memref<32x64xf32, #tpu.memory_space<vmem>>, vector<32x64xf32>
    tpu.vector_store %arg8[%c0_13, %c0_14], %15 {strides = array<i32>} : memref<32x64xf32, #tpu.memory_space<vmem>>, vector<32x64xf32>,
    %c0_i32_15 = arith.constant 0 : i32
    %17 = arith.cmpi eq, %arg1, %c0_i32_15 : i32
    %18 = arith.extui %17 : i1 to i32
    %c0_i32_16 = arith.constant 0 : i32
    %19 = arith.cmpi ne, %18, %c0_i32_16 : i32
    scf.if %19 {
      %c0_17 = arith.constant 0 : index
      %c0_18 = arith.constant 0 : index
      %20 = vector.load %arg8[%c0_17, %c0_18] : memref<32x64xf32, #tpu.memory_space<vmem>>, vector<32x64xf32>
      %c0_19 = arith.constant 0 : index
      %c0_20 = arith.constant 0 : index
      %21 = vector.load %arg5[%c0_19, %c0_20] : memref<32x64xf32, #tpu.memory_space<vmem>>, vector<32x64xf32>
      %22 = arith.addf %20, %21 : vector<32x64xf32>
      %cst_21 = arith.constant 0.000000e+00 : f32
      %23 = vector.broadcast %cst_21 : f32 to vector<32x64xf32>
      %24 = arith.maximumf %22, %23 : vector<32x64xf32>
      %25 = arith.truncf %24 : vector<32x64xf32> to vector<32x64xbf16>
      %c0_22 = arith.constant 0 : index
      %c0_23 = arith.constant 0 : index
      %26 = vector.load %arg6[%c0_22, %c0_23] : memref<64x256xbf16, #tpu.memory_space<vmem>>, vector<64x256xbf16>
      %cst_24 = arith.constant dense<0.000000e+00> : vector<32x256xf32>
      %27 = tpu.matmul %25, %26, %cst_24 {dimension_numbers = #tpu.dot_dimension_numbers<[1], [0], [0], [1], [0, 0, 1, 1], [], []>} : vector<32x64xbf16>, vector<64x256xbf16>, vector<32x256xf32> -> vector<32x256xf32>
      %c0_25 = arith.constant 0 : index
      %c8 = arith.constant 8 : index
      %c0_26 = arith.constant 0 : index
      %28 = vector.load %arg7[%c0_25, %c8, %c0_26] : memref<1x40x256xf32, #tpu.memory_space<vmem>>, vector<1x32x256xf32>
      %29 = vector.shape_cast %28 : vector<1x32x256xf32> to vector<32x256xf32>
      %30 = vector.shape_cast %27 : vector<32x256xf32> to vector<1x32x256xf32>
      tpu.vector_store %arg7[%c0_25, %c8, %c0_26], %30 {strides = array<i32>} : memref<1x40x256xf32, #tpu.memory_space<vmem>>, vector<1x32x256xf32>,
    } else {
    }
    return
  }
  func.func @transform_0(%arg0: i32, %arg1: i32) -> (i32, i32, i32) {
    %c0_i32 = arith.constant 0 : i32
    %c0_i32_0 = arith.constant 0 : i32
    return %arg0, %arg1, %c0_i32 : i32, i32, i32
  }
  func.func @transform_1(%arg0: i32, %arg1: i32) -> (i32, i32) {
    %c0_i32 = arith.constant 0 : i32
    %c0_i32_0 = arith.constant 0 : i32
    %c0_i32_1 = arith.constant 0 : i32
    return %c0_i32, %c0_i32_0 : i32, i32
  }
  func.func @transform_2(%arg0: i32, %arg1: i32) -> (i32, i32) {
    %c0_i32 = arith.constant 0 : i32
    %c0_i32_0 = arith.constant 0 : i32
    return %c0_i32, %arg1 : i32, i32
  }
  func.func @transform_3(%arg0: i32, %arg1: i32) -> (i32, i32) {
    %c0_i32 = arith.constant 0 : i32
    %c0_i32_0 = arith.constant 0 : i32
    %c0_i32_1 = arith.constant 0 : i32
    return %c0_i32, %c0_i32_0 : i32, i32
  }
  func.func @transform_4(%arg0: i32, %arg1: i32) -> (i32, i32) {
    %c0_i32 = arith.constant 0 : i32
    %c0_i32_0 = arith.constant 0 : i32
    %c0_i32_1 = arith.constant 0 : i32
    return %c0_i32, %c0_i32_0 : i32, i32
  }
  func.func @transform_5(%arg0: i32, %arg1: i32) -> (i32, i32, i32) {
    %c0_i32 = arith.constant 0 : i32
    %c0_i32_0 = arith.constant 0 : i32
    %c0_i32_1 = arith.constant 0 : i32
    return %arg0, %c0_i32, %c0_i32_0 : i32, i32, i32
  }
}

</mosaic_0001>

<bundles_post_ra>
// kernel: tpu_custom_call.1
= control target key start
LH: loop header
LB: loop body
LE: loop exit
PB: predicated region body
PF: predicated region fallthrough
CT: control target
= control target key end

     0   :  { %10 = vsyncpa [#allocation4], 0  ;;  %s1709_s0 = inlined_call_operand.hbm [shape: f32[2,8,256], index: 0, kind: input, shape index: {}]   ;;  %s1710_s1 = inlined_call_operand.hbm [shape: bf16[256,64], index: 1, kind: input, shape index: {}]   ;;  %s1711_s2 = inlined_call_operand.hbm [shape: bf16[32,8], index: 2, kind: input, shape index: {}]   ;;  %s1712_s3 = inlined_call_operand.hbm [shape: f32[32,64], index: 3, kind: input, shape index: {}]   ;;  %s1713_s4 = inlined_call_operand.hbm [shape: bf16[64,256], index: 4, kind: input, shape index: {}]   ;;  %s1714_s5 = inlined_call_operand.hbm [shape: f32[2,40,256], index: 5, kind: output, shape index: {}]  }
   0x1   :  { %12 = vsyncpa [#allocation4 + $0x1], 0 }
   0x2   :  { %13 = vsyncpa [#allocation7], 0 }
   0x3   :  { %14 = vsyncpa [#allocation10], 0 }
   0x4   :  { %15 = vsyncpa [#allocation5], 0 }
   0x5   :  { %17 = vsyncpa [#allocation5 + $0x1], 0  ;;  %s1372_s18 = smov 0   ;;  %s1374_s19 = smov 0  }
   0x6   :  { %s1376_s20 = smov 0   ;;  %s1378_s21 = smov 0  }
   0x7   :  { %s1380_s22 = smov 0   ;;  %s1382_s23 = smov 0  }
   0x8 LB: > { %s1715_s24 = sadd.s32 4294967295, %s1326_s23   ;;  %p870_p0 = scmp.ge.s32.totalorder %s1326_s23, 1  ;;  %s1326_s23 = sphi %s1382_s23, %s23_s23   ;;  %s1322_s22 = sphi %s1380_s22, %s1742_s22   ;;  %s1318_s21 = sphi %s1378_s21, %s1741_s21   ;;  %s1314_s20 = sphi %s1376_s20, %s1740_s20   ;;  %s1310_s19 = sphi %s1374_s19, %s1739_s19   ;;  %s1306_s18 = sphi %s1372_s18, %s1738_s18  }
   0x9   : > { %p1406_p1 = scmp.eq.s32.totalorder %s1715_s24, 0  ;;  %p183_p2 = scmp.lt.s32.totalorder %s1326_s23, 3 }
   0xa   : > { %s1328_s27 = smov [#allocation6]   ;;  %s1329_s30 = smov [#allocation9]  }
   0xb   : > { %s1721_s25 = scalar_select %p1406_p1, 1, 0 }
   0xc   : > { %p1411_p3 = pnand %p870_p0, %p183_p2  ;;  %s195_s28 = sshll.u32 %s1328_s27, 4  ;;  %s1415_s28 = int_to_ptr.vmem [resolvable:$true] %s195_s28 }
   0xd   : > { %s223_s6 = sshll.u32 %s1329_s30, 4  ;;  %s1094_s9 = scalar_lea.hbm %s1710_s1, 2048  ;;  %s1426_s6 = int_to_ptr.vmem [resolvable:$true] %s223_s6 }
   0xe   : > { %s1722_s26 = scalar_select %p1411_p3, 1, 0 }
   0xf   : > { %p973_p4 = pneg %p1411_p3  ;;  %p1095_p7 = scmp.ne.s32.totalorder %s1710_s1, %s1094_s9 }
  0x10   : > { %p1101_p11 = scmp.lt.u32.totalorder %s1094_s9, %s1710_s1 }
  0x11   : > { %p1422_p6 = pnand %p973_p4, %p1406_p1 }
  0x13   : > { %p1436_p8 = pneg %p1422_p6 }
  0x15   : > { %p1097_p9 = pnand %p1436_p8, %p1095_p7 }
  0x17   : > { %p1098_p10 = pneg %p1097_p9 }
  0x19   : > { %p1103_p12 = pnand %p1101_p11, %p1098_p10 }
  0x1b   : > { %1106 = shalt.err (!%p1103_p12)
}
  0x1c   : > { %s1107_s15 = scalar_lea.vmem %s1415_s28, 2048  ;;  %p1115_p4 = scmp.lt.s32.totalorder %s1415_s28, %s1415_s28 }
  0x1d   : > { %p1108_p13 = scmp.ne.s32.totalorder %s1415_s28, %s1107_s15  ;;  %p1116_p5 = scmp.lt.s32.totalorder %s1107_s15, %s1107_s15 }
  0x1f   : > { %p1110_p0 = pnand %p1108_p13, %p1436_p8  ;;  %p1117_p7 = por %p1116_p5, %p1115_p4 }
  0x21   : > { %p1111_p2 = pneg %p1110_p0 }
  0x23   : > { %p1118_p9 = pnand %p1117_p7, %p1111_p2 }
  0x25   : > { %1121 = shalt.err (!%p1118_p9)
}
  0x26   : > { %s1716_s16 = smov 64   ;;  %s1331_s17 = smov 4  }
  0x27   : > { %976 = dma.hbm_to_vmem [thread:$0]  (!%p1422_p6), %s1710_s1, 2048, %s1415_s28, [#allocation7], %s1716_s16, %s1716_s16, %s1331_s17  }
  0x28   : > { %s1122_s9 = scalar_lea.hbm %s1712_s3, 512 }
  0x29   : > { %p1123_p5 = scmp.ne.s32.totalorder %s1712_s3, %s1122_s9  ;;  %p1129_p12 = scmp.lt.u32.totalorder %s1122_s9, %s1712_s3 }
  0x2b   : > { %p1125_p10 = pnand %p1123_p5, %p1436_p8 }
  0x2d   : > { %p1126_p11 = pneg %p1125_p10 }
  0x2f   : > { %p1131_p13 = pnand %p1129_p12, %p1126_p11 }
  0x31   : > { %1134 = shalt.err (!%p1131_p13)
}
  0x32   : > { %s1135_s28 = scalar_lea.vmem %s1426_s6, 512  ;;  %p1143_p7 = scmp.lt.s32.totalorder %s1426_s6, %s1426_s6 }
  0x33   : > { %p1136_p0 = scmp.ne.s32.totalorder %s1426_s6, %s1135_s28  ;;  %p1144_p9 = scmp.lt.s32.totalorder %s1135_s28, %s1135_s28 }
  0x35   : > { %p1138_p2 = pnand %p1136_p0, %p1436_p8  ;;  %p1145_p5 = por %p1144_p9, %p1143_p7 }
  0x37   : > { %p1139_p4 = pneg %p1138_p2 }
  0x39   : > { %p1146_p10 = pnand %p1145_p5, %p1139_p4 }
  0x3b   : > { %1149 = shalt.err (!%p1146_p10)
}
  0x3c   : > { %s1332_s15 = smov 128   ;;  %s1333_s27 = smov 8  }
  0x3d   : > { %982 = dma.hbm_to_vmem [thread:$0]  (!%p1422_p6), %s1712_s3, 512, %s1426_s6, [#allocation10], %s1332_s15, %s1332_s15, %s1333_s27  }
  0x3e   : > { %s1334_s8 = smov [#allocation8]   ;;  %s1335_s10 = smov [#allocation11]  }
  0x3f   : > { %s210_s9 = sshll.u32 %s1334_s8, 4  ;;  %s236_s11 = sshll.u32 %s1335_s10, 4  ;;  %s211_s9 = int_to_ptr.vmem [resolvable:$true] %s210_s9  ;;  %s1486_s11 = int_to_ptr.vmem [resolvable:$true] %s236_s11 }
  0x40   : > { %s1150_s28 = scalar_lea.hbm %s1711_s2, 256 }
  0x41   : > { %p1151_p11 = scmp.ne.s32.totalorder %s1711_s2, %s1150_s28  ;;  %p1157_p0 = scmp.lt.u32.totalorder %s1150_s28, %s1711_s2 }
  0x43   : > { %p1153_p12 = pnand %p1151_p11, %p1436_p8 }
  0x45   : > { %p1154_p13 = pneg %p1153_p12 }
  0x47   : > { %p1159_p2 = pnand %p1157_p0, %p1154_p13 }
  0x49   : > { %1162 = shalt.err (!%p1159_p2)
}
  0x4a   : > { %s1163_s7 = scalar_lea.vmem %s211_s9, 256  ;;  %p1171_p5 = scmp.lt.s32.totalorder %s211_s9, %s211_s9 }
  0x4b   : > { %p1164_p4 = scmp.ne.s32.totalorder %s211_s9, %s1163_s7  ;;  %p1172_p10 = scmp.lt.s32.totalorder %s1163_s7, %s1163_s7 }
  0x4d   : > { %p1166_p7 = pnand %p1164_p4, %p1436_p8  ;;  %p1173_p3 = por %p1172_p10, %p1171_p5 }
  0x4f   : > { %p1167_p9 = pneg %p1166_p7 }
  0x51   : > { %p1174_p1 = pnand %p1173_p3, %p1167_p9 }
  0x53   : > { %1177 = shalt.err (!%p1174_p1)
}
  0x54   : > { %s1725_s24 = smov 64   ;;  %s1178_s14 = scalar_lea.hbm %s1713_s4, 1024 }
  0x55   : > { %979 = dma.hbm_to_vmem [thread:$0]  (!%p1422_p6), %s1711_s2, 256, %s211_s9, [#allocation7], %s1725_s24, %s1725_s24, %s1331_s17  }
  0x56   : > { %p1179_p11 = scmp.ne.s32.totalorder %s1713_s4, %s1178_s14  ;;  %p1185_p12 = scmp.lt.u32.totalorder %s1178_s14, %s1713_s4 }
  0x58   : > { %p1181_p1 = pnand %p1179_p11, %p1436_p8 }
  0x5a   : > { %p1182_p3 = pneg %p1181_p1 }
  0x5c   : > { %p1187_p13 = pnand %p1185_p12, %p1182_p3 }
  0x5e   : > { %1190 = shalt.err (!%p1187_p13)
}
  0x5f   : > { %s1191_s17 = scalar_lea.vmem %s1486_s11, 1024  ;;  %p1199_p7 = scmp.lt.s32.totalorder %s1486_s11, %s1486_s11 }
  0x60   : > { %p1192_p0 = scmp.ne.s32.totalorder %s1486_s11, %s1191_s17  ;;  %p1200_p9 = scmp.lt.s32.totalorder %s1191_s17, %s1191_s17 }
  0x62   : > { %p1194_p2 = pnand %p1192_p0, %p1436_p8  ;;  %p1201_p5 = por %p1200_p9, %p1199_p7 }
  0x64   : > { %p1195_p4 = pneg %p1194_p2 }
  0x66   : > { %p1202_p10 = pnand %p1201_p5, %p1195_p4 }
  0x68   : > { %1205 = shalt.err (!%p1202_p10)
}
  0x69   : > { %985 = dma.hbm_to_vmem [thread:$0]  (!%p1422_p6), %s1713_s4, 1024, %s1486_s11, [#allocation10], %s1332_s15, %s1332_s15, %s1333_s27  }
  0x6a   : > { %s869_s29 = sadd.s32 4294967294, %s1326_s23   ;;  %s35_s12 = sadd.s32 1, %s1322_s22 }
  0x6b   : > { %p37_p8 = scmp.ge.s32.totalorder %s35_s12, 2  ;;  %s44_s16 = sadd.s32 1, %s1314_s20 }
  0x6c   : > { %p51_p11 = scmp.ne.s32.totalorder %s1314_s20, %s1310_s19  ;;  %p52_p1 = scmp.eq.s32.totalorder %s1326_s23, 0 }
  0x6d   : > { %s1744_s12 = smov (%p37_p8, %s35_s12), 0  ;;  %p57_p12 = scmp.ne.s32.totalorder %s1310_s19, %s1306_s18 }
  0x6e   : > { %p1543_p3 = por %p52_p1, %p51_p11  ;;  %s39_s15 = ssub.s32 %s1322_s22, %s1744_s12 }
  0x6f   : > { %s1727_s27 = sadd.s32 4294967295, %s1326_s23   ;;  %p42_p13 = scmp.eq.s32.totalorder %s39_s15, 0 }
  0x70   : > { %p170_p6 = scmp.eq.s32.totalorder %s1727_s27, 1  ;;  %p1728_p0 = scmp.ne.s32.totalorder %s1721_s25, 0 }
  0x71   : > { %p176_p7 = scmp.eq.s32.totalorder %s869_s29, 1  ;;  %p998_p5 = scmp.lt.s32.totalorder %s1326_s23, 2 }
  0x72   : > { %p1555_p2 = por %p1728_p0, %p57_p12  ;;  %p1559_p4 = por %p170_p6, %p51_p11 }
  0x73   : > { %s1564_s13 = scalar_select %p42_p13, %s1314_s20, %s44_s16  }
  0x74   : > { %s1730_s10 = scalar_select %p1559_p4, 1, 0 }
  0x75   : > { %p1566_p9 = por %p176_p7, %p57_p12  ;;  %s250_s28 = sand.u32 1, %s1314_s20  }
  0x76   : > { %s918_s30 = sshll.u32 %s1322_s22, 8  ;;  %s876_s6 = sshll.u32 %s250_s28, 4 }
  0x77   : > { %s1731_s14 = scalar_select %p1566_p9, 1, 0 }
  0x78   : > { %s1576_s9 = scalar_lea.hbm %s1709_s0, %s918_s30  ;;  %s254_s24 = scalar_lea.vmem [#allocation3], %s876_s6 }
  0x79   : > { %s264_s29 = sshll.u32 %s254_s24, 4  ;;  %p1580_p10 = pnand %p998_p5, %p1543_p3  ;;  %s1584_s29 = int_to_ptr.vmem [resolvable:$true] %s264_s29 }
  0x7a   : > { %s251_s15 = scalar_lea.sflag [#allocation4], %s250_s28  ;;  %s1206_s27 = scalar_lea.hbm %s1576_s9, 256 }
  0x7b   : > { %p1207_p8 = scmp.ne.s32.totalorder %s1576_s9, %s1206_s27  ;;  %p1208_p11 = pneg %p1580_p10 }
  0x7c   : > { %s1211_s8 = scalar_lea.hbm %s1709_s0, 512  ;;  %p1212_p3 = scmp.lt.u32.totalorder %s1576_s9, %s1709_s0 }
  0x7d   : > { %p1209_p1 = pnand %p1208_p11, %p1207_p8  ;;  %p1213_p6 = scmp.lt.u32.totalorder %s1211_s8, %s1206_s27 }
  0x7e   : > { %p1215_p0 = scmp.lt.u32.totalorder %s1206_s27, %s1576_s9 }
  0x7f   : > { %p1210_p12 = pneg %p1209_p1  ;;  %p1214_p13 = por %p1213_p6, %p1212_p3 }
  0x81   : > { %p1216_p7 = por %p1215_p0, %p1214_p13 }
  0x83   : > { %p1217_p5 = pnand %p1216_p7, %p1210_p12 }
  0x85   : > { %1220 = shalt.err (!%p1217_p5)
}
  0x86   : > { %s1221_s28 = scalar_lea.vmem %s1584_s29, 256  ;;  %s1336_s24 = smov [#allocation3]  }
  0x87   : > { %p1222_p8 = scmp.ne.s32.totalorder %s1584_s29, %s1221_s28  ;;  %s1226_s30 = sshll.u32 %s1336_s24, 4  ;;  %s1227_s30 = int_to_ptr.vmem [resolvable:$false] %s1226_s30 }
  0x88   : > { %s1228_s6 = scalar_lea.vmem %s1227_s30, 512  ;;  %p1229_p4 = scmp.lt.s32.totalorder %s1584_s29, %s1227_s30 }
  0x89   : > { %p1224_p1 = pnand %p1222_p8, %p1208_p11  ;;  %p1230_p3 = scmp.lt.s32.totalorder %s1228_s6, %s1221_s28 }
  0x8b   : > { %p1225_p9 = pneg %p1224_p1  ;;  %p1231_p6 = por %p1230_p3, %p1229_p4 }
  0x8d   : > { %p1232_p13 = pnand %p1231_p6, %p1225_p9 }
  0x8f   : > { %1235 = shalt.err (!%p1232_p13)
}
  0x90   : > { %989 = dma.hbm_to_vmem [thread:$0]  (!%p1580_p10), %s1576_s9, 256, %s1584_s29, %s251_s15  }
  0x91   : > { %p1733_p12 = scmp.ne.s32.totalorder %s1722_s26, 0 }
  0x92   : > { %s1614_s27 = sand.u32 (!%p1733_p12), 1, %s1310_s19  }
  0x93   : > { %273 = sbr.rel (%p1733_p12) target bundleno = 883 (0x373), region = 40  ;;  %s880_s8 = sshll.u32 (!%p1733_p12), %s1614_s27, 4 }
  0x94   : > { %s276_s7 = scalar_lea.sflag (!%p1733_p12), [#allocation4], %s1614_s27  ;;  %s279_s17 = scalar_lea.vmem (!%p1733_p12), [#allocation3], %s880_s8 }
  0x9a   : > { %1289 = dma.done.wait (%p1555_p2), %s276_s7, 256  }
  0x9b   : > { %1291 = vsyncadd (%p1555_p2), %s276_s7, 4294967040  ;;  %p1734_p4 = scmp.ne.s32.totalorder %s1721_s25, 0 }
  0x9d   : > { %1293 = dma.done.wait (%p1734_p4), [#allocation7], 2304  }
  0x9e   : > { %1295 = vsyncadd (%p1734_p4), [#allocation7], 4294964992 }
  0x9f   : > { %1297 = dma.done.wait (%p1734_p4), [#allocation10], 1536  }
  0xa0   : > { %1299 = vsyncadd (%p1734_p4), [#allocation10], 4294965760  ;;  %v1064_v0 = vld [vmem:[#allocation6 + $0x40] sm:$0xff]   ;;  %v1066_v2 = vld [vmem:[#allocation6 + $0x48] sm:$0xff]   ;;  %s951_s26 = smul.u32 80, %s1614_s27  ;;  %vm512_vm0 = vcmask 64512  }
  0xa1   : > { %v1065_v1 = vld [vmem:[#allocation6] sm:$0xff]   ;;  %919 = vmatprep.subr.bf16.mxu0 %v1064_v0  ;;  %v1067_v3 = vld [vmem:[#allocation6 + $0x8] sm:$0xff]   ;;  %v1068_v4 = vld [vmem:[#allocation6 + $0x50] sm:$0xff]   ;;  %vm519_vm1 = vcmask 1043456   ;;  %vm576_vm2 = vcmask 523264   ;;  %v1337_v29 = vmov 0.0  }
  0xa2   : > { %920 = vmatpush3.bf16.msra.mxu0 %v1065_v1  ;;  %v1069_v5 = vld [vmem:[#allocation6 + $0x10] sm:$0xff]   ;;  %v1070_v6 = vld [vmem:[#allocation6 + $0x58] sm:$0xff]   ;;  %v1072_v8 = vld [vmem:[#allocation6 + $0x60] sm:$0xff]   ;;  %s1631_s25 = scalar_lea.vmem [#allocation12], %s951_s26  ;;  %579 = vst.msk [vmem:[#allocation2 + $0x10] sm:$0xff] %vm576_vm2, %v1337_v29  ;;  %v1338_v36 = vmov 0  }
  0xa3   : > { %921 = vmatprep.subr.bf16.mxu0 %v1066_v2  ;;  %v1071_v7 = vld [vmem:[#allocation6 + $0x18] sm:$0xff]   ;;  %v1073_v9 = vld [vmem:[#allocation6 + $0x20] sm:$0xff]   ;;  %v1074_v10 = vld [vmem:[#allocation6 + $0x68] sm:$0xff]   ;;  %577 = vst.msk [vmem:[#allocation2] sm:$0xff] %vm576_vm2, %v1337_v29  ;;  %s952_s11 = smul.u32 1280, %s1318_s21  ;;  %s744_s9 = sshll.u32 %s1631_s25, 4  ;;  %s1657_s9 = int_to_ptr.vmem [resolvable:$true] %s744_s9 }
  0xa4   : > { %v324_v11 = vld [vmem:[%s279_s17 + $0x8] sm:$0xff]  ;;  %v323_v12 = vld [vmem:[%s279_s17] sm:$0xff]  ;;  %578 = vst.msk [vmem:[#allocation2 + $0x8] sm:$0xff] %vm576_vm2, %v1337_v29  ;;  %580 = vst.msk [vmem:[#allocation2 + $0x18] sm:$0xff] %vm576_vm2, %v1337_v29  ;;  %s731_s21 = scalar_lea.sflag [#allocation5], %s1614_s27  ;;  %s1236_s28 = scalar_lea.vmem %s1657_s9, 1280 }
  0xa5   : > { %v1075_v13 = vld [vmem:[#allocation6 + $0x28] sm:$0xff]   ;;  %326 = vst [vmem:[%s1631_s25 + $0x8] sm:$0xff] %v324_v11  ;;  %v328_v14 = vpack.c.bf16 %v324_v11, %v324_v11  ;;  %325 = vst [vmem:[%s1631_s25] sm:$0xff] %v323_v12  ;;  %v1076_v15 = vld [vmem:[#allocation6 + $0x70] sm:$0xff]   ;;  %v327_v19 = vpack.c.bf16 %v323_v12, %v323_v12  ;;  %s1655_s15 = scalar_lea.hbm %s1714_s5, %s952_s11  ;;  %p1237_p2 = scmp.ne.s32.totalorder %s1657_s9, %s1236_s28 }
  0xa6   : > { %922 = vmatpush3.bf16.msra.mxu0 %v1067_v3  ;;  %v1077_v16 = vld [vmem:[#allocation6 + $0x30] sm:$0xff]   ;;  %v1078_v17 = vld [vmem:[#allocation6 + $0x78] sm:$0xff]   ;;  %v1080_v20 = vld [vmem:[#allocation8] sm:$0xff]   ;;  %p1735_p9 = scmp.ne.s32.totalorder %s1730_s10, 0  ;;  %s1339_s24 = smov [#allocation12]  }
  0xa7   : > { %923 = vmatprep.subr.bf16.mxu0 %v1068_v4  ;;  %489 = vmatprep.mubr.bf16.mxu0 %v328_v14  ;;  %v1079_v18 = vld [vmem:[#allocation6 + $0x38] sm:$0xff]   ;;  %v1081_v28 = vld [vmem:[#allocation8 + $0x8] sm:$0xff]   ;;  %v601_v51 = vld [vmem:[#allocation9] sm:$0xff]  ;;  %s1240_s30 = sshll.u32 %s1339_s24, 4  ;;  %s1241_s30 = int_to_ptr.vmem [resolvable:$false] %s1240_s30 }
  0xa8   : > { %946 = vmatprep.mubr.msk.bf16.mxu1 %vm512_vm0, %v1080_v20  ;;  %v1084_v30 = vld [vmem:[#allocation11 + $0x4] ss:$8 sps:$4 sm:$0xff]   ;;  %v1082_v31 = vld [vmem:[#allocation11] ss:$8 sps:$4 sm:$0xff]   ;;  %v1085_v32 = vld [vmem:[#allocation11 + $0x10] ss:$8 sps:$4 sm:$0xff]   ;;  %p1238_p10 = pnand %p1237_p2, %p1735_p9  ;;  %p1243_p0 = scmp.lt.s32.totalorder %s1657_s9, %s1241_s30 }
  0xa9   : > { %v1087_v33 = vld [vmem:[#allocation11 + $0x14] ss:$8 sps:$4 sm:$0xff]   ;;  %v1090_v34 = vld [vmem:[#allocation11 + $0x24] ss:$8 sps:$4 sm:$0xff]   ;;  %v1088_v35 = vld [vmem:[#allocation11 + $0x20] ss:$8 sps:$4 sm:$0xff]  }
  0xaa   : > { %924 = vmatpush3.bf16.msra.mxu0 %v1069_v5  ;;  %v1093_v37 = vld [vmem:[#allocation11 + $0x34] ss:$8 sps:$4 sm:$0xff]   ;;  %v1091_v38 = vld [vmem:[#allocation11 + $0x30] ss:$8 sps:$4 sm:$0xff]   ;;  %v583_v39 = vld [vmem:[#allocation2 + $0x10] sm:$0xff]  ;;  %p1239_p11 = pneg %p1238_p10  ;;  %s1242_s6 = scalar_lea.vmem %s1241_s30, 2560 }
  0xab   : > { %925 = vmatprep.subr.bf16.mxu0 %v1070_v6  ;;  %v581_v40 = vld [vmem:[#allocation2] sm:$0xff]  ;;  %v584_v42 = vld [vmem:[#allocation2 + $0x18] sm:$0xff]  ;;  %v582_v45 = vld [vmem:[#allocation2 + $0x8] sm:$0xff]  ;;  %p1244_p7 = scmp.lt.s32.totalorder %s1242_s6, %s1236_s28 }
  0xac   : > { %v602_v53 = vld [vmem:[#allocation9 + $0x8] sm:$0xff]  ;;  %v604_v58 = vld [vmem:[#allocation9 + $0x18] sm:$0xff]  ;;  %v603_v62 = vld [vmem:[#allocation9 + $0x10] sm:$0xff] }
  0xad   : > { %p1245_p5 = por %p1244_p7, %p1243_p0 }
  0xae   : > { %926 = vmatpush3.bf16.msra.mxu0 %v1071_v7 }
  0xaf   : > { %927 = vmatprep.subr.bf16.mxu0 %v1072_v8  ;;  %p1246_p8 = pnand %p1245_p5, %p1239_p11 }
  0xb2   : > { %928 = vmatpush3.bf16.msra.mxu0 %v1073_v9 }
  0xb3   : > { %929 = vmatprep.subr.bf16.mxu0 %v1074_v10 }
  0xb6   : > { %930 = vmatpush3.bf16.msra.mxu0 %v1075_v13 }
  0xb7   : > { %931 = vmatprep.subr.bf16.mxu0 %v1076_v15 }
  0xba   : > { %932 = vmatpush3.bf16.msra.mxu0 %v1077_v16 }
  0xbb   : > { %933 = vmatprep.subr.bf16.mxu0 %v1078_v17 }
  0xbe   : > { %934 = vmatpush3.bf16.msra.mxu0 %v1079_v18 }
  0xc1   : > { %490 = vmatmul.mubr.bf16.vlgmr.msra.gmra.mrb[0].mxu0 %v327_v19 }
 0x194   : > { %v935_v21 = vpop.f32.mrb[0].mxu0 }
 0x195   : > { %v936_v22 = vpop.f32.mrb[1].mxu0 }
 0x196   : > { %v937_v23 = vadd.f32 %v936_v22, %v935_v21  ;;  %v938_v24 = vpop.f32.mrb[2].mxu0 }
 0x197   : > { %v939_v25 = vpop.f32.mrb[3].mxu0 }
 0x198   : > { %v501_v26 = vpack.c.bf16 %v937_v23, %v937_v23 }
 0x19a   : > { %950 = vmatprep.subr.msk.bf16.mxu1 %vm519_vm1, %v501_v26  ;;  %v521_v27 = vsel %vm519_vm1, %v501_v26, 0 }
 0x19b   : > { %945 = vmatpush3.bf16.msra.mxu1 %v521_v27 }
 0x19c   : > { %669 = vmatprep.subr.bf16.mxu1 %v1084_v30 }
 0x19e   : > { %947 = vmatmul.mubr.msk.bf16.vlgmr.msra.gmra.mrb[0].mxu1 %vm512_vm0, %v1081_v28 }
 0x19f   : > { %670 = vmatpush1.bf16.msra.mxu1 %v1082_v31  ;;  %701 = vmatprep.mubr.bf16.mxu1 %v1338_v36 }
 0x1a0   : > { %671 = vmatprep.subr.bf16.mxu1 %v1087_v33 }
 0x1a3   : > { %672 = vmatpush1.bf16.msra.mxu1 %v1085_v32 }
 0x1a4   : > { %673 = vmatprep.subr.bf16.mxu1 %v1090_v34 }
 0x1a7   : > { %674 = vmatpush1.bf16.msra.mxu1 %v1088_v35 }
 0x1a8   : > { %675 = vmatprep.subr.bf16.mxu1 %v1093_v37 }
 0x1ab   : > { %676 = vmatpush1.bf16.msra.mxu1 %v1091_v38 }
 0x271   : > { %v948_v41 = vpop.f32.mrb[0].mxu1 }
 0x272   : > { %v587_v43 = vadd.f32 %v948_v41, %v583_v39  ;;  %v557_v44 = vpop.f32.mrb[1].mxu1 }
 0x273   : > { %v585_v46 = vadd.f32 %v581_v40, %v557_v44  ;;  %v949_v47 = vpop.f32.mrb[2].mxu1 }
 0x274   : > { %592 = vst.msk [vmem:[#allocation2 + $0x10] sm:$0xff] %vm576_vm2, %v587_v43  ;;  %v588_v48 = vadd.f32 %v949_v47, %v584_v42  ;;  %v560_v49 = vpop.f32.mrb[3].mxu1 }
 0x275   : > { %590 = vst.msk [vmem:[#allocation2] sm:$0xff] %vm576_vm2, %v585_v46  ;;  %v586_v50 = vadd.f32 %v582_v45, %v560_v49 }
 0x276   : > { %593 = vst.msk [vmem:[#allocation2 + $0x18] sm:$0xff] %vm576_vm2, %v588_v48 }
 0x277   : > { %591 = vst.msk [vmem:[#allocation2 + $0x8] sm:$0xff] %vm576_vm2, %v586_v50 }
 0x27b   : > { %v599_v61 = vld [vmem:[#allocation2 + $0x10] sm:$0xff] }
 0x27c   : > { %v597_v52 = vld [vmem:[#allocation2] sm:$0xff]  ;;  %v607_v1 = vadd.f32 %v603_v62, %v599_v61 }
 0x27d   : > { %v605_v54 = vadd.f32 %v601_v51, %v597_v52  ;;  %v600_v57 = vld [vmem:[#allocation2 + $0x18] sm:$0xff] }
 0x27e   : > { %v598_v55 = vld [vmem:[#allocation2 + $0x8] sm:$0xff]  ;;  %v608_v0 = vadd.f32 %v604_v58, %v600_v57  ;;  %v611_v3 = vmax.f32 %v607_v1, 0.0 }
 0x27f   : > { %v606_v56 = vadd.f32 %v602_v53, %v598_v55  ;;  %v609_v59 = vmax.f32 %v605_v54, 0.0 }
 0x280   : > { %v612_v2 = vmax.f32 %v608_v0, 0.0 }
 0x281   : > { %v610_v60 = vmax.f32 %v606_v56, 0.0 }
 0x282   : > { %v614_v4 = vpack.c.bf16 %v612_v2, %v611_v3 }
 0x283   : > { %v613_v63 = vpack.c.bf16 %v610_v60, %v609_v59 }
 0x285   : > { %913 = vmatmul.mubr.msk.bf16.vlgmr.msra.gmra.mrb[4].mxu1 %vm576_vm2, %v613_v63 }
 0x286   : > { %711 = vmatprep.mubr.bf16.mxu1 %v1338_v36 }
 0x28d   : > { %914 = vmatmul.mubr.msk.bf16.gmra.mrb[8].mxu1 %vm576_vm2, %v614_v4 }
 0x358   : > { %v703_v5 = vpop.f32.mrb[4].mxu1 }
 0x359   : > { %722 = vst [vmem:[%s1631_s25 + $0x10] sm:$0xff] %v703_v5  ;;  %v705_v6 = vpop.f32.mrb[5].mxu1 }
 0x35a   : > { %723 = vst [vmem:[%s1631_s25 + $0x18] sm:$0xff] %v705_v6  ;;  %v707_v7 = vpop.f32.mrb[6].mxu1 }
 0x35b   : > { %724 = vst [vmem:[%s1631_s25 + $0x20] sm:$0xff] %v707_v7  ;;  %v709_v8 = vpop.f32.mrb[7].mxu1 }
 0x35c   : > { %725 = vst [vmem:[%s1631_s25 + $0x28] sm:$0xff] %v709_v8 }
 0x360   : > { %v713_v9 = vpop.f32.mrb[8].mxu1 }
 0x361   : > { %726 = vst [vmem:[%s1631_s25 + $0x30] sm:$0xff] %v713_v9  ;;  %v715_v10 = vpop.f32.mrb[9].mxu1 }
 0x362   : > { %727 = vst [vmem:[%s1631_s25 + $0x38] sm:$0xff] %v715_v10  ;;  %v717_v11 = vpop.f32.mrb[10].mxu1 }
 0x363   : > { %728 = vst [vmem:[%s1631_s25 + $0x40] sm:$0xff] %v717_v11  ;;  %v719_v12 = vpop.f32.mrb[11].mxu1 }
 0x364   : > { %729 = vst [vmem:[%s1631_s25 + $0x48] sm:$0xff] %v719_v12 }
 0x365   : > { %1249 = shalt.err (!%p1246_p8)
}
 0x366   : > { %s1250_s8 = scalar_lea.hbm %s1655_s15, 1280  ;;  %s1254_s26 = scalar_lea.hbm %s1714_s5, 2560 }
 0x367   : > { %p1251_p1 = scmp.ne.s32.totalorder %s1655_s15, %s1250_s8  ;;  %p1255_p13 = scmp.lt.u32.totalorder %s1655_s15, %s1714_s5 }
 0x368   : > { %p1256_p12 = scmp.lt.u32.totalorder %s1254_s26, %s1250_s8  ;;  %p1258_p2 = scmp.lt.u32.totalorder %s1250_s8, %s1655_s15 }
 0x369   : > { %p1252_p3 = pnand %p1251_p1, %p1735_p9 }
 0x36a   : > { %p1257_p4 = por %p1256_p12, %p1255_p13 }
 0x36b   : > { %p1253_p6 = pneg %p1252_p3 }
 0x36c   : > { %p1259_p10 = por %p1258_p2, %p1257_p4 }
 0x36e   : > { %p1260_p11 = pnand %p1259_p10, %p1253_p6 }
 0x370   : > { %1263 = shalt.err (!%p1260_p11)
}
 0x371   : > { %s1340_s29 = smov 256   ;;  %s1341_s16 = smov 16  }
 0x372   : > { %971 = dma.vmem_to_hbm [thread:$0]  (%p1735_p9), %s1657_s9, 1280, %s1655_s15, %s731_s21, %s1340_s29, %s1340_s29, %s1341_s16  }
 0x373 PF: > { %s759_s28 = sand.u32 1, %s1306_s18   ;;  %p1736_p0 = scmp.ne.s32.totalorder %s1731_s14, 0 }
 0x374   : > { %p1737_p7 = scmp.ge.s32.totalorder %s1326_s23, 2  ;;  %s760_s24 = scalar_lea.sflag [#allocation5], %s759_s28 }
 0x376   : > { %p991_p5 = pnand %p1737_p7, %p1736_p0 }
 0x378   : > { %1301 = dma.done.wait (!%p991_p5), %s760_s24, 1280  }
 0x379   : > { %1303 = vsyncadd (!%p991_p5), %s760_s24, 4294966016  ;;  %s23_s23 = sadd.s32 1, %s1326_s23   ;;  %s1738_s18 = smov %s1310_s19 }
 0x37a   : > { %p20_p8 = scmp.ge.s32.totalorder %s23_s23, 4   ;;  %s1739_s19 = smov %s1314_s20 }
 0x37b   : > { %s1740_s20 = smov %s1564_s13  ;;  %s1741_s21 = smov %s1322_s22 }
 0x37c   : > { %s1742_s22 = smov %s1744_s12  ;;  %22 = sbr.rel (!%p20_p8) target bundleno = 8 (0x8), region = 110 }
 0x383   :  { %765 = vsyncpa [#allocation4], 1 }
 0x384   :  { %767 = vsyncpa [#allocation4 + $0x1], 1 }
 0x385   :  { %768 = vsyncpa [#allocation7], 1 }
 0x386   :  { %769 = vsyncpa [#allocation10], 1 }
 0x387   :  { %770 = vsyncpa [#allocation5], 1 }
 0x388   :  { %772 = vsyncpa [#allocation5 + $0x1], 1 }

</bundles_post_ra>
